<compile_context>
chip_gen: v7x
topology: tpu7x:2x2x1
jax: 0.10.0
libtpu: 0.0.40
codegen_flags: <defaults>
</compile_context>

<pallas_src>
import functools
import math

import jax
import jax.numpy as jnp
from jax import lax
from jax.experimental import pallas as pl
from jax.experimental.pallas import tpu as pltpu


# ----------------------------------------------------------------------------
# Kernels
# ----------------------------------------------------------------------------
def _wce_ls_kernel(x_ref, tgt_ref, wt_ref, w_ref, wsum_ref, o_ref,
                   *, on, off, ent_on, ent_off):
    """Single-block-over-classes kernel: one (tn, C) logits block per grid step."""
    x = x_ref[...].astype(jnp.float32)        # (TN, C) logits, promoted in-register
    tgt = tgt_ref[...]                        # (TN, 1) int32 labels
    w_t = wt_ref[...]                         # (TN, 1) f32  weight[target]
    w = w_ref[...]                            # (1,  C) f32  class weights
    wsum = wsum_ref[...]                      # (1,  1) f32  sum(weight)

    # Row-wise logsumexp pieces (reuse x - m; no full logp materialized).
    m = jnp.max(x, axis=-1, keepdims=True)
    xm = x - m
    lse = m + jnp.log(jnp.sum(jnp.exp(xm), axis=-1, keepdims=True))       # (TN,1)

    # sum_c w_c * x_c and x[row, target] via one broadcast mask against a (1,C) iota.
    dotwx = jnp.sum(w * x, axis=-1, keepdims=True)                        # (TN,1)
    col = lax.broadcasted_iota(jnp.int32, (1, x.shape[-1]), 1)            # (1, C)
    x_t = jnp.sum(jnp.where(col == tgt, x, 0.0), axis=-1, keepdims=True)  # (TN,1)

    # Folded weighted label-smoothed KL:
    #   loss_row = sum_c w_c * t_c * (log t_c - logp_c)
    #            = ent_off*(W - w_t) + ent_on*w_t
    #              - off*(sum_c w_c*logp_c) - (on-off)*w_t*logp_t
    # with sum_c w_c*logp_c = dotwx - W*lse and logp_t = x_t - lse.
    s_row = dotwx - wsum * lse
    ent = ent_off * (wsum - w_t) + ent_on * w_t
    cross = off * s_row + (on - off) * (w_t * (x_t - lse))
    o_ref[...] = ent - cross                                              # (TN,1)


def _wce_ls_chunked_kernel(x_ref, tgt_ref, wt_ref, w_ref, wsum_ref, o_ref,
                           m_sc, se_sc, dwx_sc, xt_sc,
                           *, on, off, ent_on, ent_off):
    """Class-chunked kernel (vocab-scale C): online logsumexp over chunks."""
    kc = pl.program_id(1)

    @pl.when(kc == 0)
    def _():
        m_sc[...] = jnp.full_like(m_sc, -jnp.inf)
        se_sc[...] = jnp.zeros_like(se_sc)
        dwx_sc[...] = jnp.zeros_like(dwx_sc)
        xt_sc[...] = jnp.zeros_like(xt_sc)

    x = x_ref[...].astype(jnp.float32)        # (TN, TC) class chunk
    tgt = tgt_ref[...]                        # (TN, 1)
    w = w_ref[...]                            # (1,  TC)
    tc = x.shape[-1]

    # Online logsumexp accumulation.
    m_prev = m_sc[...]
    m_new = jnp.maximum(m_prev, jnp.max(x, axis=-1, keepdims=True))
    alpha = jnp.exp(m_prev - m_new)
    se_sc[...] = alpha * se_sc[...] + jnp.sum(jnp.exp(x - m_new), axis=-1, keepdims=True)
    m_sc[...] = m_new

    # Plain running sums (independent of the max shift).
    dwx_sc[...] += jnp.sum(w * x, axis=-1, keepdims=True)
    col = kc * tc + lax.broadcasted_iota(jnp.int32, (1, tc), 1)
    xt_sc[...] += jnp.sum(jnp.where(col == tgt, x, 0.0), axis=-1, keepdims=True)

    @pl.when(kc == pl.num_programs(1) - 1)
    def _():
        wsum = wsum_ref[...]                  # (1, 1)
        w_t = wt_ref[...]                     # (TN, 1)
        lse = m_sc[...] + jnp.log(se_sc[...])
        s_row = dwx_sc[...] - wsum * lse
        ent = ent_off * (wsum - w_t) + ent_on * w_t
        cross = off * s_row + (on - off) * (w_t * (xt_sc[...] - lse))
        o_ref[...] = ent - cross


# ----------------------------------------------------------------------------
# Tiling helpers
# ----------------------------------------------------------------------------
def _vmem_capacity_bytes():
    try:
        return int(pltpu.get_tpu_info().vmem_capacity_bytes)
    except Exception:
        return 64 * 1024 * 1024               # conservative (v7x-sized) fallback


def _sublane_multiple(dtype):
    # 8 sublanes for 4-byte, 16 for 2-byte (bf16), 32 for 1-byte dtypes.
    itemsize = jnp.dtype(dtype).itemsize
    return max(8, 32 // max(itemsize, 1))


def _pick_row_tile(n, c_block, dtype, vmem_cap, max_tn=1024):
    """c_block = classes resident per grid step (full C or the class chunk)."""
    sub = _sublane_multiple(dtype)
    itemsize = jnp.dtype(dtype).itemsize
    # Budget: double-buffered native-dtype logits block + ~4 live (tn, c_block)
    # f32-sized body temporaries; keep under half of VMEM so the pipeline keeps
    # full double-buffering on every generation (incl. v7x's 64 MiB VMEM).
    per_row_bytes = c_block * (2 * itemsize + 16) + 64
    tn = (vmem_cap // 2) // max(per_row_bytes, 1)
    # Keep >= 4 row tiles when the batch allows it: >= 2 grid steps per v7x
    # TensorCore and >= 2 steps for DMA/compute overlap everywhere.
    if n >= 4 * sub:
        tn = min(tn, n // 4)
    tn = min(tn, max_tn, pl.cdiv(n, sub) * sub)
    return max(sub, (int(tn) // sub) * sub)


# ----------------------------------------------------------------------------
# Wrapper
# ----------------------------------------------------------------------------
def weighted_ce_label_smoothing(inputs, targets, weight, smoothing=0.1,
                                tn=None, tc=None):
    """inputs: (..., C) logits (native dtype); targets: (...,) int; weight: (C,)."""
    c = inputs.shape[-1]
    x = inputs.reshape(-1, c)                 # native dtype; reshape is free
    n = x.shape[0]

    tgt = targets.reshape(-1).astype(jnp.int32)
    w_f32 = weight.astype(jnp.float32).reshape(-1)
    tgt2d = tgt.reshape(n, 1)
    wt2d = jnp.take(w_f32, tgt).reshape(n, 1)          # tiny gather: weight[target]
    w2d = w_f32.reshape(1, c)
    wsum2d = jnp.sum(w_f32).reshape(1, 1)

    smoothing = float(smoothing)
    on = 1.0 - smoothing + smoothing / c
    off = smoothing / c
    # xlogy-style constants: 0 * log(0) := 0 (matches PyTorch kl_div's zeroing
    # of target==0 entries, so smoothing == 0 is exact).
    ent_on = on * math.log(on) if on > 0.0 else 0.0
    ent_off = off * math.log(off) if off > 0.0 else 0.0

    vmem_cap = _vmem_capacity_bytes()
    sub = _sublane_multiple(x.dtype)

    # Vocab-scale C: stream classes in 128-multiple chunks (online logsumexp)
    # so the row tile stays large on v7x's 64 MiB VMEM.
    if tc is None and c % 128 == 0 and c >= 8192:
        for cand in (2048, 1024, 512, 256, 128):
            if c % cand == 0:
                tc = cand
                break
    if tc is not None:
        assert c % tc == 0 and tc % 128 == 0, "class chunk must be a 128-multiple dividing C"

    c_block = tc if tc is not None else c
    if tn is None:
        tn = _pick_row_tile(n, c_block, x.dtype, vmem_cap)
    tn = max(sub, (int(tn) // sub) * sub)
    num_row_tiles = pl.cdiv(n, tn)            # ragged: boundary blocks write-masked

    common = dict(on=on, off=off, ent_on=ent_on, ent_off=ent_off)
    vmem_limit = int(min(vmem_cap * 3 // 4, 100 * 1024 * 1024))

    if tc is None:
        kernel = functools.partial(_wce_ls_kernel, **common)
        grid = (num_row_tiles,)
        in_specs = [
            pl.BlockSpec((tn, c), lambda i: (i, 0)),
            pl.BlockSpec((tn, 1), lambda i: (i, 0)),
            pl.BlockSpec((tn, 1), lambda i: (i, 0)),
            pl.BlockSpec((1, c), lambda i: (0, 0)),
            pl.BlockSpec((1, 1), lambda i: (0, 0)),
        ]
        out_specs = pl.BlockSpec((tn, 1), lambda i: (i, 0))
        scratch = []
        dims = ("parallel",)
    else:
        kernel = functools.partial(_wce_ls_chunked_kernel, **common)
        grid = (num_row_tiles, c // tc)
        in_specs = [
            pl.BlockSpec((tn, tc), lambda i, k: (i, k)),
            pl.BlockSpec((tn, 1), lambda i, k: (i, 0)),
            pl.BlockSpec((tn, 1), lambda i, k: (i, 0)),
            pl.BlockSpec((1, tc), lambda i, k: (0, k)),
            pl.BlockSpec((1, 1), lambda i, k: (0, 0)),
        ]
        out_specs = pl.BlockSpec((tn, 1), lambda i, k: (i, 0))
        scratch = [pltpu.VMEM((tn, 1), jnp.float32)] * 4   # m, se, sum(w*x), x[tgt]
        dims = ("parallel", "arbitrary")

    per_row = pl.pallas_call(
        kernel,
        out_shape=jax.ShapeDtypeStruct((n, 1), jnp.float32),
        grid_spec=pltpu.PrefetchScalarGridSpec(
            num_scalar_prefetch=0,
            grid=grid,
            in_specs=in_specs,
            out_specs=out_specs,
            scratch_shapes=scratch,
        ),
        compiler_params=pltpu.CompilerParams(
            dimension_semantics=dims,
            vmem_limit_bytes=vmem_limit,
        ),
    )(x, tgt2d, wt2d, w2d, wsum2d)

    # loss.sum(dim=-1).mean()  ==  sum(per-row losses) / N
    return jnp.sum(per_row[:, 0]) / jnp.float32(n)


# ----------------------------------------------------------------------------
# Pure-JAX reference (mirrors the PyTorch module) and self-test
# ----------------------------------------------------------------------------
def _reference(inputs, targets, weight, smoothing=0.1):
    c = inputs.shape[-1]
    logp = jax.nn.log_softmax(inputs.astype(jnp.float32), axis=-1)
    onehot = jax.nn.one_hot(targets, c, dtype=jnp.float32)
    t = (1.0 - smoothing) * onehot + smoothing / c
    loss = t * (jnp.log(t) - logp)                     # kl_div, t > 0 everywhere
    loss = loss * weight[None, :].astype(jnp.float32)
    return loss.sum(axis=-1).mean()


if __name__ == "__main__":
    smoothing = 0.1
    key = jax.random.PRNGKey(0)
    k1, k2, k3, k4, k5, k6 = jax.random.split(key, 6)

    # Case 1: tile-divisible batch, default tiling.
    N1, C1 = 16, 32
    x1 = jax.random.normal(k1, (N1, C1), dtype=jnp.float32)
    t1 = jax.random.randint(k2, (N1,), 0, C1, dtype=jnp.int32)
    w1 = jnp.linspace(0.5, 1.5, C1, dtype=jnp.float32)
    out1 = jax.block_until_ready(weighted_ce_label_smoothing(x1, t1, w1, smoothing))
    ref1 = _reference(x1, t1, w1, smoothing)
    assert jnp.allclose(out1, ref1, rtol=1e-5, atol=1e-5), (out1, ref1)

    # Case 2: ragged batch (no wrapper-side pad; boundary block write-masked).
    N2, C2 = 18, 32
    x2 = jax.random.normal(k3, (N2, C2), dtype=jnp.float32)
    t2 = jax.random.randint(k4, (N2,), 0, C2, dtype=jnp.int32)
    w2 = jnp.linspace(1.5, 0.5, C2, dtype=jnp.float32)
    out2 = jax.block_until_ready(weighted_ce_label_smoothing(x2, t2, w2, smoothing, tn=8))
    ref2 = _reference(x2, t2, w2, smoothing)
    assert jnp.allclose(out2, ref2, rtol=1e-5, atol=1e-5), (out2, ref2)

    # Case 3: class-chunked online-logsumexp path (forced at small C).
    N3, C3 = 24, 256
    x3 = jax.random.normal(k5, (N3, C3), dtype=jnp.float32)
    t3 = jax.random.randint(k6, (N3,), 0, C3, dtype=jnp.int32)
    w3 = jnp.linspace(0.75, 1.25, C3, dtype=jnp.float32)
    out3 = jax.block_until_ready(
        weighted_ce_label_smoothing(x3, t3, w3, smoothing, tn=8, tc=128))
    ref3 = _reference(x3, t3, w3, smoothing)
    assert jnp.allclose(out3, ref3, rtol=1e-5, atol=1e-5), (out3, ref3)

    # Case 4: smoothing == 0 (pure weighted NLL; kl_div zeroes target==0 terms).
    out4 = jax.block_until_ready(weighted_ce_label_smoothing(x1, t1, w1, 0.0))
    logp1 = jax.nn.log_softmax(x1, axis=-1)
    ref4 = -jnp.mean(w1[t1] * jnp.take_along_axis(logp1, t1[:, None], axis=-1)[:, 0])
    assert jnp.allclose(out4, ref4, rtol=1e-5, atol=1e-5), (out4, ref4)

    print("KERNEL_OK")
</pallas_src>

<mosaic_0001>
module attributes {stable_mosaic.version = 11 : i64} {
  func.func @_wce_ls_kernel(%arg0: i32, %arg1: memref<16x32xf32, #tpu.memory_space<vmem>>, %arg2: memref<16x1xi32, #tpu.memory_space<vmem>>, %arg3: memref<16x1xf32, #tpu.memory_space<vmem>>, %arg4: memref<1x32xf32, #tpu.memory_space<vmem>>, %arg5: memref<1x1xf32, #tpu.memory_space<vmem>>, %arg6: memref<16x1xf32, #tpu.memory_space<vmem>>) attributes {dimension_semantics = [#tpu.dimension_semantics<parallel>], iteration_bounds = array<i64: 1>, scalar_prefetch = 0 : i64, scratch_operands = 0 : i64, tpu.core_type = #tpu.core_type<tc>, window_params = [{transform_indices = @transform_0, window_bounds = array<i64: 16, 32>}, {transform_indices = @transform_1, window_bounds = array<i64: 16, 1>}, {transform_indices = @transform_2, window_bounds = array<i64: 16, 1>}, {pipeline_mode = #tpu.pipeline_mode<synchronous>, transform_indices = @transform_3, window_bounds = array<i64: 1, 32>}, {pipeline_mode = #tpu.pipeline_mode<synchronous>, transform_indices = @transform_4, window_bounds = array<i64: 1, 1>}, {transform_indices = @transform_5, window_bounds = array<i64: 16, 1>}]} {
    %c0 = arith.constant 0 : index
    %c0_0 = arith.constant 0 : index
    %0 = vector.load %arg1[%c0, %c0_0] : memref<16x32xf32, #tpu.memory_space<vmem>>, vector<16x32xf32>
    %c0_1 = arith.constant 0 : index
    %c0_2 = arith.constant 0 : index
    %1 = vector.load %arg2[%c0_1, %c0_2] : memref<16x1xi32, #tpu.memory_space<vmem>>, vector<16x1xi32>
    %c0_3 = arith.constant 0 : index
    %c0_4 = arith.constant 0 : index
    %2 = vector.load %arg3[%c0_3, %c0_4] : memref<16x1xf32, #tpu.memory_space<vmem>>, vector<16x1xf32>
    %c0_5 = arith.constant 0 : index
    %c0_6 = arith.constant 0 : index
    %3 = vector.load %arg4[%c0_5, %c0_6] : memref<1x32xf32, #tpu.memory_space<vmem>>, vector<1x32xf32>
    %c0_7 = arith.constant 0 : index
    %c0_8 = arith.constant 0 : index
    %4 = vector.load %arg5[%c0_7, %c0_8] : memref<1x1xf32, #tpu.memory_space<vmem>>, vector<1x1xf32>
    %cst = arith.constant dense<0xFF800000> : vector<16xf32>
    %5 = vector.multi_reduction <maximumf>, %0, %cst [1] : vector<16x32xf32> to vector<16xf32>
    %6 = vector.shape_cast %5 : vector<16xf32> to vector<16x1xf32>
    %7 = vector.broadcast %6 : vector<16x1xf32> to vector<16x32xf32>
    %8 = arith.subf %0, %7 : vector<16x32xf32>
    %9 = math.exp %8 : vector<16x32xf32>
    %cst_9 = arith.constant dense<0.000000e+00> : vector<16xf32>
    %10 = vector.multi_reduction <add>, %9, %cst_9 [1] : vector<16x32xf32> to vector<16xf32>
    %11 = vector.shape_cast %10 : vector<16xf32> to vector<16x1xf32>
    %12 = math.log %11 : vector<16x1xf32>
    %13 = arith.addf %6, %12 : vector<16x1xf32>
    %14 = vector.broadcast %3 : vector<1x32xf32> to vector<16x32xf32>
    %15 = arith.mulf %14, %0 : vector<16x32xf32>
    %cst_10 = arith.constant dense<0.000000e+00> : vector<16xf32>
    %16 = vector.multi_reduction <add>, %15, %cst_10 [1] : vector<16x32xf32> to vector<16xf32>
    %17 = vector.shape_cast %16 : vector<16xf32> to vector<16x1xf32>
    %18 = tpu.iota {dimensions = array<i32: 1>} : vector<1x32xi32>
    %19 = vector.broadcast %18 : vector<1x32xi32> to vector<16x32xi32>
    %20 = vector.broadcast %1 : vector<16x1xi32> to vector<16x32xi32>
    %21 = arith.cmpi eq, %19, %20 : vector<16x32xi32>
    %cst_11 = arith.constant 0.000000e+00 : f32
    %22 = vector.broadcast %cst_11 : f32 to vector<16x32xf32>
    %23 = arith.select %21, %0, %22 : vector<16x32xi1>, vector<16x32xf32>
    %cst_12 = arith.constant dense<0.000000e+00> : vector<16xf32>
    %24 = vector.multi_reduction <add>, %23, %cst_12 [1] : vector<16x32xf32> to vector<16xf32>
    %25 = vector.shape_cast %24 : vector<16xf32> to vector<16x1xf32>
    %26 = vector.broadcast %4 : vector<1x1xf32> to vector<16x1xf32>
    %27 = arith.mulf %26, %13 : vector<16x1xf32>
    %28 = arith.subf %17, %27 : vector<16x1xf32>
    %29 = vector.broadcast %4 : vector<1x1xf32> to vector<16x1xf32>
    %30 = arith.subf %29, %2 : vector<16x1xf32>
    %cst_13 = arith.constant -0.0180260036 : f32
    %31 = vector.broadcast %cst_13 : f32 to vector<16x1xf32>
    %32 = arith.mulf %31, %30 : vector<16x1xf32>
    %cst_14 = arith.constant -9.202330e-02 : f32
    %33 = vector.broadcast %cst_14 : f32 to vector<16x1xf32>
    %34 = arith.mulf %33, %2 : vector<16x1xf32>
    %35 = arith.addf %32, %34 : vector<16x1xf32>
    %cst_15 = arith.constant 3.125000e-03 : f32
    %36 = vector.broadcast %cst_15 : f32 to vector<16x1xf32>
    %37 = arith.mulf %36, %28 : vector<16x1xf32>
    %38 = arith.subf %25, %13 : vector<16x1xf32>
    %39 = arith.mulf %2, %38 : vector<16x1xf32>
    %cst_16 = arith.constant 0.899999976 : f32
    %40 = vector.broadcast %cst_16 : f32 to vector<16x1xf32>
    %41 = arith.mulf %40, %39 : vector<16x1xf32>
    %42 = arith.addf %37, %41 : vector<16x1xf32>
    %43 = arith.subf %35, %42 : vector<16x1xf32>
    %c0_17 = arith.constant 0 : index
    %c0_18 = arith.constant 0 : index
    %44 = vector.load %arg6[%c0_17, %c0_18] : memref<16x1xf32, #tpu.memory_space<vmem>>, vector<16x1xf32>
    tpu.vector_store %arg6[%c0_17, %c0_18], %43 {strides = array<i32>} : memref<16x1xf32, #tpu.memory_space<vmem>>, vector<16x1xf32>,
    return
  }
  func.func @transform_0(%arg0: i32) -> (i32, i32) {
    %c0_i32 = arith.constant 0 : i32
    %c0_i32_0 = arith.constant 0 : i32
    return %arg0, %c0_i32 : i32, i32
  }
  func.func @transform_1(%arg0: i32) -> (i32, i32) {
    %c0_i32 = arith.constant 0 : i32
    %c0_i32_0 = arith.constant 0 : i32
    return %arg0, %c0_i32 : i32, i32
  }
  func.func @transform_2(%arg0: i32) -> (i32, i32) {
    %c0_i32 = arith.constant 0 : i32
    %c0_i32_0 = arith.constant 0 : i32
    return %arg0, %c0_i32 : i32, i32
  }
  func.func @transform_3(%arg0: i32) -> (i32, i32) {
    %c0_i32 = arith.constant 0 : i32
    %c0_i32_0 = arith.constant 0 : i32
    %c0_i32_1 = arith.constant 0 : i32
    return %c0_i32, %c0_i32_0 : i32, i32
  }
  func.func @transform_4(%arg0: i32) -> (i32, i32) {
    %c0_i32 = arith.constant 0 : i32
    %c0_i32_0 = arith.constant 0 : i32
    %c0_i32_1 = arith.constant 0 : i32
    return %c0_i32, %c0_i32_0 : i32, i32
  }
  func.func @transform_5(%arg0: i32) -> (i32, i32) {
    %c0_i32 = arith.constant 0 : i32
    %c0_i32_0 = arith.constant 0 : i32
    return %arg0, %c0_i32 : i32, i32
  }
}

</mosaic_0001>

<bundles_post_ra>
// kernel: tpu_custom_call.1
= control target key start
LH: loop header
LB: loop body
LE: loop exit
PB: predicated region body
PF: predicated region fallthrough
CT: control target
= control target key end

     0   :  { %vm30_vm0 = vcmask 261120   ;;  %v137_v2 = vmov 0   ;;  %v69_v11 = vlaneseq  ;;  %vm117_vm3 = vcmask 7168   ;;  %s206_s0 = inlined_call_operand.vmem [shape: f32[16,32], index: 0, kind: input, shape index: {}]   ;;  %s207_s1 = inlined_call_operand.vmem [shape: s32[16,1], index: 1, kind: input, shape index: {}]   ;;  %s208_s3 = inlined_call_operand.vmem [shape: f32[1,32], index: 3, kind: input, shape index: {}]   ;;  %s209_s4 = inlined_call_operand.<no memory space> [shape: f32[1,1], index: 4, kind: input, shape index: {}]   ;;  %s210_s2 = inlined_call_operand.vmem [shape: f32[16,1], index: 2, kind: input, shape index: {}]   ;;  %s211_s5 = inlined_call_operand.vmem [shape: f32[16,1], index: 5, kind: output, shape index: {}]  }
   0x1   :  { %v22_v0 = vld [vmem:[%s206_s0] sm:$0xff]  ;;  %v23_v1 = vld [vmem:[%s206_s0 + $0x8] sm:$0xff]  ;;  %127 = vset.pattern.permute.xlu1 %v137_v2  ;;  %128 = vset.pattern.permute.xlu0 %v137_v2  ;;  %v10_v30 = vstv %s209_s4 }
   0x2   :  { %v24_v3 = vld [vmem:[%s207_s1] sm:$0xff]  ;;  %v31_v4 = vsel %vm30_vm0, %v22_v0, -inf  ;;  %v25_v5 = vld [vmem:[%s207_s1 + $0x8] sm:$0xff]  ;;  %v34_v6 = vsel %vm30_vm0, %v23_v1, -inf  ;;  %v70_v15 = vand.u32 127, %v69_v11 }
   0x3   :  { %72 = vperm.xlu1 %127, %v24_v3   ;;  %32 = vmax.xlane.f32.xlu0 %v31_v4  ;;  %v124_v23 = vld [vmem:[%s208_s3] ss:$0 sm:$0xff]  ;;  %11 = vst [vmem:[#allocation2] sm:$0x1] %v10_v30  ;;  %v27_v40 = vld [vmem:[%s210_s2 + $0x8] sm:$0xff] }
   0x4   :  { %v61_v26 = vmul.f32 %v124_v23, %v22_v0  ;;  %v62_v28 = vmul.f32 %v124_v23, %v23_v1  ;;  %v26_v34 = vld [vmem:[%s210_s2] sm:$0xff]  ;;  %v102_v53 = vmul.f32 -0.0920233, %v27_v40 }
   0x5   :  { %v101_v44 = vmul.f32 -0.0920233, %v26_v34 }
   0x6   :  { %v63_v27 = vsel %vm30_vm0, %v61_v26, 0.0  ;;  %v66_v29 = vsel %vm30_vm0, %v62_v28, 0.0 }
   0x7   :  { %75 = vperm.xlu1 %127, %v25_v5   ;;  %35 = vmax.xlane.f32.xlu0 %v34_v6 }
   0xa   :  { %v125_v36 = vld [vmem:[#allocation2] ss:$0 sm:$0xff] }
   0xb   :  { %v97_v38 = vsub.f32 %v125_v36, %v26_v34  ;;  %v98_v46 = vsub.f32 %v125_v36, %v27_v40 }
   0xd   :  { %v99_v45 = vmul.f32 -0.018026004, %v97_v38  ;;  %v100_v55 = vmul.f32 -0.018026004, %v98_v46 }
   0xf   :  { %v103_v54 = vadd.f32 %v101_v44, %v99_v45  ;;  %v104_v2 = vadd.f32 %v102_v53, %v100_v55 }
  0x82   :  { %v73_v14 = vpop.permute.xlu1 %72 }
  0x83   :  { %vm77_vm1 = vcmp.eq.s32.totalorder %v70_v15, %v73_v14 }
  0x84   :  { %v79_v18 = vsel %vm77_vm1, %v22_v0, 0.0 }
  0x85   :  { %v81_v20 = vsel %vm30_vm0, %v79_v18, 0.0 }
  0x86   :  { %v76_v16 = vpop.permute.xlu1 %75 }
  0x87   :  { %vm78_vm2 = vcmp.eq.s32.totalorder %v70_v15, %v76_v16 }
  0x88   :  { %v80_v22 = vsel %vm78_vm2, %v23_v1, 0.0 }
  0x89   :  { %v84_v25 = vsel %vm30_vm0, %v80_v22, 0.0 }
  0x90   :  { %v33_v7 = vpop.xlane.xlu0 %32 }
  0x91   :  { %v37_v8 = vsub.f32 %v22_v0, %v33_v7 }
  0x93   :  { %v39_v9 = vmul.f32 1.442695, %v37_v8 }
  0x94   :  { %v36_v10 = vpop.xlane.xlu0 %35 }
  0x95   :  { %129 = vpow2.f32 %v39_v9  ;;  %v38_v12 = vsub.f32 %v23_v1, %v36_v10 }
  0x97   :  { %v41_v13 = vmul.f32 1.442695, %v38_v12 }
  0x99   :  { %131 = vpow2.f32 %v41_v13 }
  0x9f   :  { %v130_v17 = vpop.eup %129 }
  0xa0   :  { %v43_v19 = vsel %vm30_vm0, %v130_v17, 0.0 }
  0xa1   :  { %44 = vadd.xlane.f32.xlu0 %v43_v19 }
  0xa3   :  { %v132_v21 = vpop.eup %131 }
  0xa4   :  { %v46_v24 = vsel %vm30_vm0, %v132_v21, 0.0 }
  0xa5   :  { %47 = vadd.xlane.f32.xlu1 %v46_v24  ;;  %82 = vadd.xlane.f32.xlu0 %v81_v20 }
  0xa9   :  { %85 = vadd.xlane.f32.xlu0 %v84_v25 }
  0xad   :  { %64 = vadd.xlane.f32.xlu0 %v63_v27 }
  0xb1   :  { %67 = vadd.xlane.f32.xlu0 %v66_v29 }
 0x12e   :  { %v45_v31 = vpop.xlane.xlu0 %44 }
 0x12f   :  { %133 = vlog2.f32 %v45_v31 }
 0x132   :  { %v48_v32 = vpop.xlane.xlu1 %47  ;;  %v83_v33 = vpop.xlane.xlu0 %82 }
 0x133   :  { %135 = vlog2.f32 %v48_v32 }
 0x136   :  { %v86_v35 = vpop.xlane.xlu0 %85 }
 0x139   :  { %v134_v37 = vpop.eup %133 }
 0x13a   :  { %v50_v39 = vmul.f32 0.6931472, %v134_v37  ;;  %v65_v41 = vpop.xlane.xlu0 %64 }
 0x13c   :  { %v53_v42 = vadd.f32 %v50_v39, %v33_v7 }
 0x13d   :  { %v136_v43 = vpop.eup %135 }
 0x13e   :  { %v52_v47 = vmul.f32 0.6931472, %v136_v43  ;;  %v107_v48 = vsub.f32 %v83_v33, %v53_v42  ;;  %v93_v49 = vmul.f32 %v125_v36, %v53_v42  ;;  %v68_v56 = vpop.xlane.xlu0 %67 }
 0x140   :  { %v109_v50 = vmul.f32 %v107_v48, %v26_v34  ;;  %v54_v51 = vadd.f32 %v52_v47, %v36_v10  ;;  %v95_v52 = vsub.f32 %v65_v41, %v93_v49 }
 0x142   :  { %v111_v57 = vmul.f32 0.9, %v109_v50  ;;  %v108_v58 = vsub.f32 %v86_v35, %v54_v51  ;;  %v105_v59 = vmul.f32 0.003125, %v95_v52  ;;  %v94_v60 = vmul.f32 %v125_v36, %v54_v51 }
 0x144   :  { %v110_v61 = vmul.f32 %v108_v58, %v27_v40  ;;  %v113_v62 = vadd.f32 %v111_v57, %v105_v59  ;;  %v96_v63 = vsub.f32 %v68_v56, %v94_v60 }
 0x146   :  { %v112_v0 = vmul.f32 0.9, %v110_v61  ;;  %v115_v1 = vsub.f32 %v103_v54, %v113_v62  ;;  %v106_v3 = vmul.f32 0.003125, %v96_v63 }
 0x148   :  { %118 = vst.msk [vmem:[%s211_s5] sm:$0xff] %vm117_vm3, %v115_v1  ;;  %v114_v4 = vadd.f32 %v112_v0, %v106_v3 }
 0x14a   :  { %v116_v5 = vsub.f32 %v104_v2, %v114_v4 }
 0x14c   :  { %119 = vst.msk [vmem:[%s211_s5 + $0x8] sm:$0xff] %vm117_vm3, %v116_v5 }

</bundles_post_ra>
